<compile_context>
chip_gen: v7x
topology: tpu7x:2x2x1
jax: 0.10.0
libtpu: 0.0.40
codegen_flags: <defaults>
</compile_context>

<pallas_src>
import jax
import jax.numpy as jnp
from jax.experimental import pallas as pl
from jax.experimental.pallas import tpu as pltpu


# ----------------------------------------------------------------------------
# Deterministic "gemmi.Op" parameters (no gemmi dependency).
# Emulates gemmi.Op("-y,x,z+1/3"): DEN = 24, rot = DEN * R, applied as hkl @ rot.
# R maps (h, k, l) -> (-k, h, l).
# ----------------------------------------------------------------------------
GEMMI_DEN = 24.0
_R_LIST = (
    (0.0, 1.0, 0.0),
    (-1.0, 0.0, 0.0),
    (0.0, 0.0, 1.0),
)
ROT = GEMMI_DEN * jnp.array(_R_LIST, dtype=jnp.float32)   # _rot buffer (3, 3)
DEN = jnp.float32(GEMMI_DEN)                              # _den buffer
IS_IDENTITY = False                                       # triplet != "x,y,z"

_SMALL_N_THRESHOLD = 65536     # below this, plain XLA beats a Pallas launch


def _as_signed_permutation(r_list):
    """If R is a signed permutation, return (perm, signs) with
    out[:, r] = signs[r] * in[:, perm[r]]; else None."""
    perm, signs = [], []
    for r in range(3):                       # output component r
        nz = [c for c in range(3) if r_list[c][r] != 0.0]
        if len(nz) != 1:
            return None
        c = nz[0]
        s = r_list[c][r]
        if s not in (1.0, -1.0):
            return None
        perm.append(c)
        signs.append(int(s))
    return tuple(perm), tuple(signs)


_SIGNED_PERM = _as_signed_permutation(_R_LIST)


# ----------------------------------------------------------------------------
# Pallas kernel: natural-layout (block_n, 3) tile, signed column permutation
# done in the original dtype (pure VPU; no MXU, no divide, no concatenate).
# ----------------------------------------------------------------------------
def _make_perm_kernel(perm, signs, apply_floor):
    def kernel(x_ref, o_ref):
        x = x_ref[...]                                     # (block_n, 3)
        for r in range(3):                                 # output column r
            col = x[:, perm[r]:perm[r] + 1]                # (block_n, 1)
            if signs[r] < 0:
                col = -col
            if apply_floor:                                # float inputs only
                col = jnp.floor(col)
            o_ref[:, r:r + 1] = col.astype(o_ref.dtype)
        return
    return kernel


def _xla_fast(hkl):
    """Fused XLA permute/negate for signed-permutation operators."""
    perm, signs = _SIGNED_PERM
    cols = []
    for r in range(3):
        col = hkl[:, perm[r]]
        if signs[r] < 0:
            col = -col
        if jnp.issubdtype(hkl.dtype, jnp.floating):
            col = jnp.floor(col)
        cols.append(col)
    return jnp.stack(cols, axis=1).astype(hkl.dtype)


def _reference(hkl: jax.Array) -> jax.Array:
    """Pure-JAX reference mirroring the PyTorch forward exactly."""
    if IS_IDENTITY:
        return hkl
    h = hkl.astype(jnp.float32)
    out = jnp.floor((h @ ROT) / DEN)
    return out.astype(hkl.dtype)


def op_forward(hkl: jax.Array, *, use_pallas=None, max_block_n: int = 16384) -> jax.Array:
    """Applies the symmetry operator to hkl of shape [N, 3]."""
    if IS_IDENTITY:
        return hkl

    n, d = hkl.shape
    assert d == 3, "hkl must have trailing dim 3"

    if _SIGNED_PERM is None:
        # TODO(synk): general rational-R operators (true divide + floor) fall
        # back to the XLA reference formula; no dedicated Pallas path here.
        return _reference(hkl)

    if use_pallas is None:
        use_pallas = n >= _SMALL_N_THRESHOLD
    if (not use_pallas) or n < 8:
        return _xla_fast(hkl)

    perm, signs = _SIGNED_PERM
    apply_floor = bool(jnp.issubdtype(hkl.dtype, jnp.floating))

    # block_n: multiple of 8 (sublane), never larger than N (N >= 8 here).
    block_n = min(max_block_n, (n // 8) * 8)
    grid = (pl.cdiv(n, block_n),)          # last block is partial; Pallas masks it

    return pl.pallas_call(
        _make_perm_kernel(perm, signs, apply_floor),
        out_shape=jax.ShapeDtypeStruct((n, 3), hkl.dtype),
        grid=grid,
        in_specs=[pl.BlockSpec((block_n, 3), lambda i: (i, 0))],
        out_specs=pl.BlockSpec((block_n, 3), lambda i: (i, 0)),
        compiler_params=pltpu.CompilerParams(
            dimension_semantics=("parallel",),
            vmem_limit_bytes=48 * 1024 * 1024,
        ),
    )(hkl)


if __name__ == "__main__":
    key = jax.random.PRNGKey(0)

    # Deterministic Miller-index-like input.  N deliberately NOT a multiple of
    # the block size (and not of 128) to exercise the in-kernel ragged tail.
    N = 777
    hkl = jax.random.randint(key, (N, 3), minval=-64, maxval=65, dtype=jnp.int32)
    ref = _reference(hkl)

    # 1) Pallas path, multi-step grid with a partial (masked) last block.
    out_multi = jax.block_until_ready(op_forward(hkl, use_pallas=True, max_block_n=256))
    # 2) Pallas path, default (large) block size.
    out_big = jax.block_until_ready(op_forward(hkl, use_pallas=True))
    # 3) Auto path: small N -> fused XLA permute/negate fast path.
    small = hkl[:200]
    out_small = jax.block_until_ready(op_forward(small))

    assert out_multi.shape == hkl.shape and out_multi.dtype == hkl.dtype
    assert bool(jnp.all(out_multi == ref))
    assert bool(jnp.all(out_big == ref))
    assert bool(jnp.all(out_small == _reference(small)))

    print("KERNEL_OK")
</pallas_src>

<mosaic_0001>
module attributes {stable_mosaic.version = 11 : i64} {
  func.func @kernel(%arg0: i32, %arg1: memref<256x3xi32, #tpu.memory_space<vmem>>, %arg2: memref<256x3xi32, #tpu.memory_space<vmem>>) attributes {dimension_semantics = [#tpu.dimension_semantics<parallel>], iteration_bounds = array<i64: 4>, scalar_prefetch = 0 : i64, scratch_operands = 0 : i64, tpu.core_type = #tpu.core_type<tc>, window_params = [{transform_indices = @transform_0, window_bounds = array<i64: 256, 3>}, {transform_indices = @transform_1, window_bounds = array<i64: 256, 3>}]} {
    %c0 = arith.constant 0 : index
    %c0_0 = arith.constant 0 : index
    %0 = vector.load %arg1[%c0, %c0_0] : memref<256x3xi32, #tpu.memory_space<vmem>>, vector<256x3xi32>
    %1 = vector.extract_strided_slice %0 {offsets = [0, 1], sizes = [256, 1], strides = [1, 1]} : vector<256x3xi32> to vector<256x1xi32>
    %c0_i32 = arith.constant 0 : i32
    %2 = vector.broadcast %c0_i32 : i32 to vector<256x1xi32>
    %3 = arith.subi %2, %1 : vector<256x1xi32>
    %c0_1 = arith.constant 0 : index
    %c0_2 = arith.constant 0 : index
    %4 = vector.load %arg2[%c0_1, %c0_2] : memref<256x3xi32, #tpu.memory_space<vmem>>, vector<256x1xi32>
    tpu.vector_store %arg2[%c0_1, %c0_2], %3 {strides = array<i32>} : memref<256x3xi32, #tpu.memory_space<vmem>>, vector<256x1xi32>,
    %5 = vector.extract_strided_slice %0 {offsets = [0, 0], sizes = [256, 1], strides = [1, 1]} : vector<256x3xi32> to vector<256x1xi32>
    %c0_3 = arith.constant 0 : index
    %c1 = arith.constant 1 : index
    %6 = vector.load %arg2[%c0_3, %c1] : memref<256x3xi32, #tpu.memory_space<vmem>>, vector<256x1xi32>
    tpu.vector_store %arg2[%c0_3, %c1], %5 {strides = array<i32>} : memref<256x3xi32, #tpu.memory_space<vmem>>, vector<256x1xi32>,
    %7 = vector.extract_strided_slice %0 {offsets = [0, 2], sizes = [256, 1], strides = [1, 1]} : vector<256x3xi32> to vector<256x1xi32>
    %c0_4 = arith.constant 0 : index
    %c2 = arith.constant 2 : index
    %8 = vector.load %arg2[%c0_4, %c2] : memref<256x3xi32, #tpu.memory_space<vmem>>, vector<256x1xi32>
    tpu.vector_store %arg2[%c0_4, %c2], %7 {strides = array<i32>} : memref<256x3xi32, #tpu.memory_space<vmem>>, vector<256x1xi32>,
    return
  }
  func.func @transform_0(%arg0: i32) -> (i32, i32) {
    %c0_i32 = arith.constant 0 : i32
    %c0_i32_0 = arith.constant 0 : i32
    return %arg0, %c0_i32 : i32, i32
  }
  func.func @transform_1(%arg0: i32) -> (i32, i32) {
    %c0_i32 = arith.constant 0 : i32
    %c0_i32_0 = arith.constant 0 : i32
    return %arg0, %c0_i32 : i32, i32
  }
}

</mosaic_0001>

<bundles_post_ra>
// kernel: tpu_custom_call.1
= control target key start
LH: loop header
LB: loop body
LE: loop exit
PB: predicated region body
PF: predicated region fallthrough
CT: control target
= control target key end

     0   :  { %s985_s6 = smov 0   ;;  %s987_s7 = smov 0   ;;  %s1614_s0 = inlined_call_operand.vmem [shape: s32[777,3], index: 0, kind: input, shape index: {}]   ;;  %s1615_s1 = inlined_call_operand.vmem [shape: s32[777,3], index: 1, kind: output, shape index: {}]  }
   0x1   :  { %s989_s8 = smov 0  }
   0x2 LB: > { %s998_s9 = sadd.s32 4294967295, %s939_s8   ;;  %s1000_s10 = sadd.s32 1, %s939_s8   ;;  %s939_s8 = sphi %s989_s8, %s1624_s8   ;;  %s935_s7 = sphi %s987_s7, %s1623_s7   ;;  %s931_s6 = sphi %s985_s6, %s1622_s6  }
   0x3   : > { %s41_s11 = ssub.s32 %s939_s8, %s1000_s10  ;;  %s44_s12 = sadd.s32 1, %s935_s7 }
   0x4   : > { %p42_p0 = scmp.eq.s32.totalorder %s41_s11, 0  ;;  %p54_p1 = scmp.ne.s32.totalorder %s935_s7, %s931_s6 }
   0x5   : > { %p55_p2 = scmp.eq.s32.totalorder %s998_s9, 3  ;;  %p771_p3 = scmp.ge.s32.totalorder %s939_s8, 1 }
   0x6   : > { %s1008_s13 = scalar_select %p42_p0, %s935_s7, %s44_s12  }
   0x7   : > { %p1010_p4 = por %p55_p2, %p54_p1  ;;  %p96_p5 = scmp.lt.s32.totalorder %s939_s8, 5 }
   0x9   : > { %p97_p6 = pnand %p771_p3, %p96_p5 }
   0xa   : > { %s1015_s15 = sshll.u32 (!%p97_p6), %s998_s9, 5  ;;  %s973_s21 = smov (!%p97_p6), 127   ;;  %vm266_vm0 = vcmask (!%p97_p6), 7168   ;;  %vm363_vm1 = vcmask (!%p97_p6), 15368   ;;  %vm396_vm2 = vcmask (!%p97_p6), 23568  }
   0xb   : > { %100 = sbr.rel (%p97_p6) target bundleno = 322 (0x142), region = 24  ;;  %p124_p7 = scmp.lt.s32.totalorder (!%p97_p6), %s1015_s15, 97 }
   0xc   : > { %s974_s22 = smov (!%p97_p6), 1   ;;  %s116_s23 = sand.u32 (!%p97_p6), 1, %s931_s6  }
   0xd   : > { %s772_s24 = sshll.u32 (!%p97_p6), %s116_s23, 8 }
   0xe   : > { %s1237_s25 = scalar_lea.vmem (!%p97_p6), [#allocation2], %s772_s24  }
  0x12   : > { %s125_s16 = scalar_select %p124_p7, %s1015_s15, 97 }
  0x13   : > { %s437_s26 = ssub.s32 (%p1010_p4), 98, %s1015_s15  ;;  %s792_s27 = sshll.u32 (%p1010_p4), %s998_s9, 8 }
  0x14   : > { %s774_s17 = sshll.u32 %s125_s16, 3  ;;  %p438_p8 = scmp.lt.s32.totalorder (%p1010_p4), %s437_s26, 32 }
  0x15   : > { %s1022_s20 = scalar_lea.vmem %s1614_s0, %s774_s17  ;;  %s1482_s30 = scalar_lea.vmem (%p1010_p4), %s1615_s1, %s792_s27  }
  0x16   : > { %v1025_v0 = vld [vmem:[%s1022_s20 + $0x10] sm:$0xff]  ;;  %v1028_v1 = vld [vmem:[%s1022_s20] sm:$0xff]  ;;  %v1031_v2 = vld [vmem:[%s1022_s20 + $0x18] sm:$0xff] }
  0x17   : > { %v172_v3 = vsub.s32 0, %v1025_v0  ;;  %v170_v4 = vsub.s32 0, %v1028_v1  ;;  %v1036_v5 = vld [vmem:[%s1022_s20 + $0x8] sm:$0xff]  ;;  %v173_v6 = vsub.s32 0, %v1031_v2  ;;  %v1046_v9 = vld [vmem:[%s1022_s20 + $0x20] sm:$0xff]  ;;  %v1053_v12 = vld [vmem:[%s1022_s20 + $0x38] sm:$0xff] }
  0x18   : > { %v171_v7 = vsub.s32 0, %v1036_v5  ;;  %v1043_v8 = vld [vmem:[%s1022_s20 + $0x28] sm:$0xff]  ;;  %v174_v11 = vsub.s32 0, %v1046_v9  ;;  %v1056_v13 = vld [vmem:[%s1022_s20 + $0x30] sm:$0xff]  ;;  %v177_v14 = vsub.s32 0, %v1053_v12  ;;  %v1066_v17 = vld [vmem:[%s1022_s20 + $0x40] sm:$0xff] }
  0x19   : > { %206 = vrot.lane.b32.xlu1 %v172_v3, %s973_s21  ;;  %202 = vrot.lane.b32.xlu0 %v170_v4, %s973_s21  ;;  %v175_v10 = vsub.s32 0, %v1043_v8  ;;  %v176_v15 = vsub.s32 0, %v1056_v13  ;;  %v1063_v16 = vld [vmem:[%s1022_s20 + $0x48] sm:$0xff]  ;;  %v178_v19 = vsub.s32 0, %v1066_v17  ;;  %v1073_v20 = vld [vmem:[%s1022_s20 + $0x58] sm:$0xff] }
  0x1a   : > { %v179_v18 = vsub.s32 0, %v1063_v16  ;;  %v1076_v21 = vld [vmem:[%s1022_s20 + $0x50] sm:$0xff]  ;;  %v181_v22 = vsub.s32 0, %v1073_v20  ;;  %v1083_v24 = vld [vmem:[%s1022_s20 + $0x68] sm:$0xff]  ;;  %v1086_v25 = vld [vmem:[%s1022_s20 + $0x60] sm:$0xff] }
  0x1b   : > { %v180_v23 = vsub.s32 0, %v1076_v21  ;;  %v183_v26 = vsub.s32 0, %v1083_v24  ;;  %v182_v27 = vsub.s32 0, %v1086_v25  ;;  %v1093_v28 = vld [vmem:[%s1022_s20 + $0x78] sm:$0xff]  ;;  %v1096_v29 = vld [vmem:[%s1022_s20 + $0x70] sm:$0xff]  ;;  %v1103_v32 = vld [vmem:[%s1022_s20 + $0x88] sm:$0xff] }
  0x1c   : > { %v185_v30 = vsub.s32 0, %v1093_v28  ;;  %v184_v31 = vsub.s32 0, %v1096_v29  ;;  %v1106_v33 = vld [vmem:[%s1022_s20 + $0x80] sm:$0xff]  ;;  %v187_v34 = vsub.s32 0, %v1103_v32  ;;  %v1113_v36 = vld [vmem:[%s1022_s20 + $0x98] sm:$0xff]  ;;  %v1116_v37 = vld [vmem:[%s1022_s20 + $0x90] sm:$0xff] }
  0x1d   : > { %208 = vrot.lane.b32.xlu1 %v173_v6, %s973_s21  ;;  %204 = vrot.lane.b32.xlu0 %v171_v7, %s973_s21  ;;  %v186_v35 = vsub.s32 0, %v1106_v33  ;;  %v189_v38 = vsub.s32 0, %v1113_v36  ;;  %v188_v39 = vsub.s32 0, %v1116_v37  ;;  %v1123_v40 = vld [vmem:[%s1022_s20 + $0xa8] sm:$0xff]  ;;  %v1126_v41 = vld [vmem:[%s1022_s20 + $0xa0] sm:$0xff] }
  0x1e   : > { %v191_v42 = vsub.s32 0, %v1123_v40  ;;  %v190_v43 = vsub.s32 0, %v1126_v41  ;;  %v1133_v44 = vld [vmem:[%s1022_s20 + $0xb8] sm:$0xff]  ;;  %v1136_v45 = vld [vmem:[%s1022_s20 + $0xb0] sm:$0xff]  ;;  %v1143_v48 = vld [vmem:[%s1022_s20 + $0xc8] sm:$0xff] }
  0x1f   : > { %v193_v46 = vsub.s32 0, %v1133_v44  ;;  %v192_v47 = vsub.s32 0, %v1136_v45  ;;  %v1146_v49 = vld [vmem:[%s1022_s20 + $0xc0] sm:$0xff]  ;;  %v195_v50 = vsub.s32 0, %v1143_v48  ;;  %v1153_v52 = vld [vmem:[%s1022_s20 + $0xd8] sm:$0xff]  ;;  %v1156_v53 = vld [vmem:[%s1022_s20 + $0xd0] sm:$0xff] }
  0x20   : > { %v194_v51 = vsub.s32 0, %v1146_v49  ;;  %v197_v54 = vsub.s32 0, %v1153_v52  ;;  %v196_v55 = vsub.s32 0, %v1156_v53  ;;  %v1163_v56 = vld [vmem:[%s1022_s20 + $0xe8] sm:$0xff]  ;;  %v1166_v57 = vld [vmem:[%s1022_s20 + $0xe0] sm:$0xff]  ;;  %v1173_v60 = vld [vmem:[%s1022_s20 + $0xf8] sm:$0xff] }
  0x21   : > { %212 = vrot.lane.b32.xlu1 %v175_v10, %s973_s21  ;;  %210 = vrot.lane.b32.xlu0 %v174_v11, %s973_s21  ;;  %v199_v58 = vsub.s32 0, %v1163_v56  ;;  %v198_v59 = vsub.s32 0, %v1166_v57  ;;  %v1176_v61 = vld [vmem:[%s1022_s20 + $0xf0] sm:$0xff]  ;;  %v201_v62 = vsub.s32 0, %v1173_v60 }
  0x22   : > { %v200_v63 = vsub.s32 0, %v1176_v61 }
  0x25   : > { %216 = vrot.lane.b32.xlu1 %v177_v14, %s973_s21  ;;  %214 = vrot.lane.b32.xlu0 %v176_v15, %s973_s21 }
  0x29   : > { %220 = vrot.lane.b32.xlu1 %v179_v18, %s973_s21  ;;  %218 = vrot.lane.b32.xlu0 %v178_v19, %s973_s21 }
  0x2d   : > { %224 = vrot.lane.b32.xlu1 %v181_v22, %s973_s21  ;;  %222 = vrot.lane.b32.xlu0 %v180_v23, %s973_s21 }
  0x31   : > { %228 = vrot.lane.b32.xlu1 %v183_v26, %s973_s21  ;;  %226 = vrot.lane.b32.xlu0 %v182_v27, %s973_s21 }
  0x35   : > { %232 = vrot.lane.b32.xlu1 %v185_v30, %s973_s21  ;;  %230 = vrot.lane.b32.xlu0 %v184_v31, %s973_s21 }
  0x39   : > { %236 = vrot.lane.b32.xlu1 %v187_v34, %s973_s21  ;;  %234 = vrot.lane.b32.xlu0 %v186_v35, %s973_s21 }
  0x3d   : > { %240 = vrot.lane.b32.xlu1 %v189_v38, %s973_s21  ;;  %238 = vrot.lane.b32.xlu0 %v188_v39, %s973_s21 }
  0x41   : > { %244 = vrot.lane.b32.xlu1 %v191_v42, %s973_s21  ;;  %242 = vrot.lane.b32.xlu0 %v190_v43, %s973_s21 }
  0x45   : > { %248 = vrot.lane.b32.xlu1 %v193_v46, %s973_s21  ;;  %246 = vrot.lane.b32.xlu0 %v192_v47, %s973_s21 }
  0x49   : > { %252 = vrot.lane.b32.xlu1 %v195_v50, %s973_s21  ;;  %250 = vrot.lane.b32.xlu0 %v194_v51, %s973_s21 }
  0x4d   : > { %256 = vrot.lane.b32.xlu1 %v197_v54, %s973_s21  ;;  %254 = vrot.lane.b32.xlu0 %v196_v55, %s973_s21 }
  0x51   : > { %260 = vrot.lane.b32.xlu1 %v199_v58, %s973_s21  ;;  %258 = vrot.lane.b32.xlu0 %v198_v59, %s973_s21 }
  0x55   : > { %264 = vrot.lane.b32.xlu1 %v201_v62, %s973_s21  ;;  %262 = vrot.lane.b32.xlu0 %v200_v63, %s973_s21 }
  0x59   : > { %301 = vrot.lane.b32.xlu1 %v1036_v5, %s974_s22  ;;  %299 = vrot.lane.b32.xlu0 %v1028_v1, %s974_s22 }
  0x5d   : > { %305 = vrot.lane.b32.xlu1 %v1031_v2, %s974_s22  ;;  %303 = vrot.lane.b32.xlu0 %v1025_v0, %s974_s22 }
  0x61   : > { %309 = vrot.lane.b32.xlu1 %v1043_v8, %s974_s22  ;;  %307 = vrot.lane.b32.xlu0 %v1046_v9, %s974_s22 }
  0x65   : > { %313 = vrot.lane.b32.xlu1 %v1053_v12, %s974_s22  ;;  %311 = vrot.lane.b32.xlu0 %v1056_v13, %s974_s22 }
  0x69   : > { %317 = vrot.lane.b32.xlu1 %v1063_v16, %s974_s22  ;;  %315 = vrot.lane.b32.xlu0 %v1066_v17, %s974_s22 }
  0x6d   : > { %321 = vrot.lane.b32.xlu1 %v1073_v20, %s974_s22  ;;  %319 = vrot.lane.b32.xlu0 %v1076_v21, %s974_s22 }
  0x71   : > { %325 = vrot.lane.b32.xlu1 %v1083_v24, %s974_s22  ;;  %323 = vrot.lane.b32.xlu0 %v1086_v25, %s974_s22 }
  0x75   : > { %329 = vrot.lane.b32.xlu1 %v1093_v28, %s974_s22  ;;  %327 = vrot.lane.b32.xlu0 %v1096_v29, %s974_s22 }
  0x79   : > { %333 = vrot.lane.b32.xlu1 %v1103_v32, %s974_s22  ;;  %331 = vrot.lane.b32.xlu0 %v1106_v33, %s974_s22 }
  0x7d   : > { %337 = vrot.lane.b32.xlu1 %v1113_v36, %s974_s22  ;;  %335 = vrot.lane.b32.xlu0 %v1116_v37, %s974_s22 }
  0x81   : > { %341 = vrot.lane.b32.xlu1 %v1123_v40, %s974_s22  ;;  %339 = vrot.lane.b32.xlu0 %v1126_v41, %s974_s22 }
  0x85   : > { %345 = vrot.lane.b32.xlu1 %v1133_v44, %s974_s22  ;;  %343 = vrot.lane.b32.xlu0 %v1136_v45, %s974_s22 }
  0x89   : > { %349 = vrot.lane.b32.xlu1 %v1143_v48, %s974_s22  ;;  %347 = vrot.lane.b32.xlu0 %v1146_v49, %s974_s22 }
  0x8b   : > { %v207_v3 = vpop.permute.xlu1 %206  ;;  %v203_v4 = vpop.permute.xlu0 %202 }
  0x8c   : > { %269 = vst.msk [vmem:[%s1237_s25 + $0x10] sm:$0xff] %vm266_vm0, %v207_v3  ;;  %267 = vst.msk [vmem:[%s1237_s25] sm:$0xff] %vm266_vm0, %v203_v4 }
  0x8d   : > { %353 = vrot.lane.b32.xlu1 %v1153_v52, %s974_s22  ;;  %351 = vrot.lane.b32.xlu0 %v1156_v53, %s974_s22 }
  0x8f   : > { %v209_v6 = vpop.permute.xlu1 %208  ;;  %v205_v7 = vpop.permute.xlu0 %204 }
  0x90   : > { %270 = vst.msk [vmem:[%s1237_s25 + $0x18] sm:$0xff] %vm266_vm0, %v209_v6  ;;  %268 = vst.msk [vmem:[%s1237_s25 + $0x8] sm:$0xff] %vm266_vm0, %v205_v7 }
  0x91   : > { %357 = vrot.lane.b32.xlu1 %v1163_v56, %s974_s22  ;;  %355 = vrot.lane.b32.xlu0 %v1166_v57, %s974_s22 }
  0x93   : > { %v213_v10 = vpop.permute.xlu1 %212  ;;  %v211_v11 = vpop.permute.xlu0 %210 }
  0x94   : > { %272 = vst.msk [vmem:[%s1237_s25 + $0x28] sm:$0xff] %vm266_vm0, %v213_v10  ;;  %271 = vst.msk [vmem:[%s1237_s25 + $0x20] sm:$0xff] %vm266_vm0, %v211_v11 }
  0x95   : > { %361 = vrot.lane.b32.xlu1 %v1173_v60, %s974_s22  ;;  %359 = vrot.lane.b32.xlu0 %v1176_v61, %s974_s22 }
  0x97   : > { %v217_v14 = vpop.permute.xlu1 %216  ;;  %v215_v15 = vpop.permute.xlu0 %214 }
  0x98   : > { %274 = vst.msk [vmem:[%s1237_s25 + $0x38] sm:$0xff] %vm266_vm0, %v217_v14  ;;  %273 = vst.msk [vmem:[%s1237_s25 + $0x30] sm:$0xff] %vm266_vm0, %v215_v15 }
  0x9b   : > { %v221_v18 = vpop.permute.xlu1 %220  ;;  %v219_v19 = vpop.permute.xlu0 %218 }
  0x9c   : > { %276 = vst.msk [vmem:[%s1237_s25 + $0x48] sm:$0xff] %vm266_vm0, %v221_v18  ;;  %275 = vst.msk [vmem:[%s1237_s25 + $0x40] sm:$0xff] %vm266_vm0, %v219_v19 }
  0x9f   : > { %v225_v22 = vpop.permute.xlu1 %224  ;;  %v223_v23 = vpop.permute.xlu0 %222 }
  0xa0   : > { %278 = vst.msk [vmem:[%s1237_s25 + $0x58] sm:$0xff] %vm266_vm0, %v225_v22  ;;  %277 = vst.msk [vmem:[%s1237_s25 + $0x50] sm:$0xff] %vm266_vm0, %v223_v23 }
  0xa3   : > { %v229_v26 = vpop.permute.xlu1 %228  ;;  %v227_v27 = vpop.permute.xlu0 %226 }
  0xa4   : > { %280 = vst.msk [vmem:[%s1237_s25 + $0x68] sm:$0xff] %vm266_vm0, %v229_v26  ;;  %279 = vst.msk [vmem:[%s1237_s25 + $0x60] sm:$0xff] %vm266_vm0, %v227_v27 }
  0xa7   : > { %v233_v30 = vpop.permute.xlu1 %232  ;;  %v231_v31 = vpop.permute.xlu0 %230 }
  0xa8   : > { %282 = vst.msk [vmem:[%s1237_s25 + $0x78] sm:$0xff] %vm266_vm0, %v233_v30  ;;  %281 = vst.msk [vmem:[%s1237_s25 + $0x70] sm:$0xff] %vm266_vm0, %v231_v31 }
  0xab   : > { %v237_v34 = vpop.permute.xlu1 %236  ;;  %v235_v35 = vpop.permute.xlu0 %234 }
  0xac   : > { %284 = vst.msk [vmem:[%s1237_s25 + $0x88] sm:$0xff] %vm266_vm0, %v237_v34  ;;  %283 = vst.msk [vmem:[%s1237_s25 + $0x80] sm:$0xff] %vm266_vm0, %v235_v35 }
  0xaf   : > { %v241_v38 = vpop.permute.xlu1 %240  ;;  %v239_v39 = vpop.permute.xlu0 %238 }
  0xb0   : > { %286 = vst.msk [vmem:[%s1237_s25 + $0x98] sm:$0xff] %vm266_vm0, %v241_v38  ;;  %285 = vst.msk [vmem:[%s1237_s25 + $0x90] sm:$0xff] %vm266_vm0, %v239_v39 }
  0xb3   : > { %v245_v42 = vpop.permute.xlu1 %244  ;;  %v243_v43 = vpop.permute.xlu0 %242 }
  0xb4   : > { %288 = vst.msk [vmem:[%s1237_s25 + $0xa8] sm:$0xff] %vm266_vm0, %v245_v42  ;;  %287 = vst.msk [vmem:[%s1237_s25 + $0xa0] sm:$0xff] %vm266_vm0, %v243_v43 }
  0xb7   : > { %v249_v46 = vpop.permute.xlu1 %248  ;;  %v247_v47 = vpop.permute.xlu0 %246 }
  0xb8   : > { %290 = vst.msk [vmem:[%s1237_s25 + $0xb8] sm:$0xff] %vm266_vm0, %v249_v46  ;;  %289 = vst.msk [vmem:[%s1237_s25 + $0xb0] sm:$0xff] %vm266_vm0, %v247_v47 }
  0xbb   : > { %v253_v50 = vpop.permute.xlu1 %252  ;;  %v251_v51 = vpop.permute.xlu0 %250 }
  0xbc   : > { %292 = vst.msk [vmem:[%s1237_s25 + $0xc8] sm:$0xff] %vm266_vm0, %v253_v50  ;;  %291 = vst.msk [vmem:[%s1237_s25 + $0xc0] sm:$0xff] %vm266_vm0, %v251_v51 }
  0xbf   : > { %v257_v54 = vpop.permute.xlu1 %256  ;;  %v255_v55 = vpop.permute.xlu0 %254 }
  0xc0   : > { %294 = vst.msk [vmem:[%s1237_s25 + $0xd8] sm:$0xff] %vm266_vm0, %v257_v54  ;;  %293 = vst.msk [vmem:[%s1237_s25 + $0xd0] sm:$0xff] %vm266_vm0, %v255_v55 }
  0xc3   : > { %v261_v58 = vpop.permute.xlu1 %260  ;;  %v259_v59 = vpop.permute.xlu0 %258 }
  0xc4   : > { %296 = vst.msk [vmem:[%s1237_s25 + $0xe8] sm:$0xff] %vm266_vm0, %v261_v58  ;;  %295 = vst.msk [vmem:[%s1237_s25 + $0xe0] sm:$0xff] %vm266_vm0, %v259_v59 }
  0xc7   : > { %v265_v62 = vpop.permute.xlu1 %264  ;;  %v263_v63 = vpop.permute.xlu0 %262 }
  0xc8   : > { %298 = vst.msk [vmem:[%s1237_s25 + $0xf8] sm:$0xff] %vm266_vm0, %v265_v62  ;;  %297 = vst.msk [vmem:[%s1237_s25 + $0xf0] sm:$0xff] %vm266_vm0, %v263_v63 }
  0xcb   : > { %v302_v3 = vpop.permute.xlu1 %301  ;;  %v300_v4 = vpop.permute.xlu0 %299 }
  0xcc   : > { %365 = vst.msk [vmem:[%s1237_s25 + $0x8] sm:$0xff] %vm363_vm1, %v302_v3  ;;  %364 = vst.msk [vmem:[%s1237_s25] sm:$0xff] %vm363_vm1, %v300_v4 }
  0xcd   : > { %398 = vst.msk [vmem:[%s1237_s25 + $0x8] sm:$0xff] %vm396_vm2, %v1036_v5  ;;  %397 = vst.msk [vmem:[%s1237_s25] sm:$0xff] %vm396_vm2, %v1028_v1 }
  0xcf   : > { %v306_v6 = vpop.permute.xlu1 %305  ;;  %v304_v7 = vpop.permute.xlu0 %303 }
  0xd0   : > { %367 = vst.msk [vmem:[%s1237_s25 + $0x18] sm:$0xff] %vm363_vm1, %v306_v6  ;;  %366 = vst.msk [vmem:[%s1237_s25 + $0x10] sm:$0xff] %vm363_vm1, %v304_v7 }
  0xd1   : > { %400 = vst.msk [vmem:[%s1237_s25 + $0x18] sm:$0xff] %vm396_vm2, %v1031_v2  ;;  %399 = vst.msk [vmem:[%s1237_s25 + $0x10] sm:$0xff] %vm396_vm2, %v1025_v0 }
  0xd3   : > { %v310_v5 = vpop.permute.xlu1 %309  ;;  %v308_v1 = vpop.permute.xlu0 %307 }
  0xd4   : > { %369 = vst.msk [vmem:[%s1237_s25 + $0x28] sm:$0xff] %vm363_vm1, %v310_v5  ;;  %368 = vst.msk [vmem:[%s1237_s25 + $0x20] sm:$0xff] %vm363_vm1, %v308_v1 }
  0xd5   : > { %402 = vst.msk [vmem:[%s1237_s25 + $0x28] sm:$0xff] %vm396_vm2, %v1043_v8  ;;  %401 = vst.msk [vmem:[%s1237_s25 + $0x20] sm:$0xff] %vm396_vm2, %v1046_v9 }
  0xd7   : > { %v314_v2 = vpop.permute.xlu1 %313  ;;  %v312_v0 = vpop.permute.xlu0 %311 }
  0xd8   : > { %371 = vst.msk [vmem:[%s1237_s25 + $0x38] sm:$0xff] %vm363_vm1, %v314_v2  ;;  %370 = vst.msk [vmem:[%s1237_s25 + $0x30] sm:$0xff] %vm363_vm1, %v312_v0 }
  0xd9   : > { %404 = vst.msk [vmem:[%s1237_s25 + $0x38] sm:$0xff] %vm396_vm2, %v1053_v12  ;;  %403 = vst.msk [vmem:[%s1237_s25 + $0x30] sm:$0xff] %vm396_vm2, %v1056_v13 }
  0xdb   : > { %v318_v8 = vpop.permute.xlu1 %317  ;;  %v316_v9 = vpop.permute.xlu0 %315 }
  0xdc   : > { %373 = vst.msk [vmem:[%s1237_s25 + $0x48] sm:$0xff] %vm363_vm1, %v318_v8  ;;  %372 = vst.msk [vmem:[%s1237_s25 + $0x40] sm:$0xff] %vm363_vm1, %v316_v9 }
  0xdd   : > { %406 = vst.msk [vmem:[%s1237_s25 + $0x48] sm:$0xff] %vm396_vm2, %v1063_v16  ;;  %405 = vst.msk [vmem:[%s1237_s25 + $0x40] sm:$0xff] %vm396_vm2, %v1066_v17 }
  0xdf   : > { %v322_v12 = vpop.permute.xlu1 %321  ;;  %v320_v13 = vpop.permute.xlu0 %319 }
  0xe0   : > { %375 = vst.msk [vmem:[%s1237_s25 + $0x58] sm:$0xff] %vm363_vm1, %v322_v12  ;;  %374 = vst.msk [vmem:[%s1237_s25 + $0x50] sm:$0xff] %vm363_vm1, %v320_v13 }
  0xe1   : > { %408 = vst.msk [vmem:[%s1237_s25 + $0x58] sm:$0xff] %vm396_vm2, %v1073_v20  ;;  %407 = vst.msk [vmem:[%s1237_s25 + $0x50] sm:$0xff] %vm396_vm2, %v1076_v21 }
  0xe3   : > { %v326_v16 = vpop.permute.xlu1 %325  ;;  %v324_v17 = vpop.permute.xlu0 %323 }
  0xe4   : > { %377 = vst.msk [vmem:[%s1237_s25 + $0x68] sm:$0xff] %vm363_vm1, %v326_v16  ;;  %376 = vst.msk [vmem:[%s1237_s25 + $0x60] sm:$0xff] %vm363_vm1, %v324_v17 }
  0xe5   : > { %410 = vst.msk [vmem:[%s1237_s25 + $0x68] sm:$0xff] %vm396_vm2, %v1083_v24  ;;  %409 = vst.msk [vmem:[%s1237_s25 + $0x60] sm:$0xff] %vm396_vm2, %v1086_v25 }
  0xe7   : > { %v330_v20 = vpop.permute.xlu1 %329  ;;  %v328_v21 = vpop.permute.xlu0 %327 }
  0xe8   : > { %379 = vst.msk [vmem:[%s1237_s25 + $0x78] sm:$0xff] %vm363_vm1, %v330_v20  ;;  %378 = vst.msk [vmem:[%s1237_s25 + $0x70] sm:$0xff] %vm363_vm1, %v328_v21 }
  0xe9   : > { %412 = vst.msk [vmem:[%s1237_s25 + $0x78] sm:$0xff] %vm396_vm2, %v1093_v28  ;;  %411 = vst.msk [vmem:[%s1237_s25 + $0x70] sm:$0xff] %vm396_vm2, %v1096_v29 }
  0xeb   : > { %v334_v24 = vpop.permute.xlu1 %333  ;;  %v332_v25 = vpop.permute.xlu0 %331 }
  0xec   : > { %381 = vst.msk [vmem:[%s1237_s25 + $0x88] sm:$0xff] %vm363_vm1, %v334_v24  ;;  %380 = vst.msk [vmem:[%s1237_s25 + $0x80] sm:$0xff] %vm363_vm1, %v332_v25 }
  0xed   : > { %414 = vst.msk [vmem:[%s1237_s25 + $0x88] sm:$0xff] %vm396_vm2, %v1103_v32  ;;  %413 = vst.msk [vmem:[%s1237_s25 + $0x80] sm:$0xff] %vm396_vm2, %v1106_v33 }
  0xef   : > { %v338_v28 = vpop.permute.xlu1 %337  ;;  %v336_v29 = vpop.permute.xlu0 %335 }
  0xf0   : > { %383 = vst.msk [vmem:[%s1237_s25 + $0x98] sm:$0xff] %vm363_vm1, %v338_v28  ;;  %382 = vst.msk [vmem:[%s1237_s25 + $0x90] sm:$0xff] %vm363_vm1, %v336_v29 }
  0xf1   : > { %416 = vst.msk [vmem:[%s1237_s25 + $0x98] sm:$0xff] %vm396_vm2, %v1113_v36  ;;  %415 = vst.msk [vmem:[%s1237_s25 + $0x90] sm:$0xff] %vm396_vm2, %v1116_v37 }
  0xf3   : > { %v342_v32 = vpop.permute.xlu1 %341  ;;  %v340_v33 = vpop.permute.xlu0 %339 }
  0xf4   : > { %385 = vst.msk [vmem:[%s1237_s25 + $0xa8] sm:$0xff] %vm363_vm1, %v342_v32  ;;  %384 = vst.msk [vmem:[%s1237_s25 + $0xa0] sm:$0xff] %vm363_vm1, %v340_v33 }
  0xf5   : > { %418 = vst.msk [vmem:[%s1237_s25 + $0xa8] sm:$0xff] %vm396_vm2, %v1123_v40  ;;  %417 = vst.msk [vmem:[%s1237_s25 + $0xa0] sm:$0xff] %vm396_vm2, %v1126_v41 }
  0xf7   : > { %v346_v36 = vpop.permute.xlu1 %345  ;;  %v344_v37 = vpop.permute.xlu0 %343 }
  0xf8   : > { %387 = vst.msk [vmem:[%s1237_s25 + $0xb8] sm:$0xff] %vm363_vm1, %v346_v36  ;;  %386 = vst.msk [vmem:[%s1237_s25 + $0xb0] sm:$0xff] %vm363_vm1, %v344_v37 }
  0xf9   : > { %420 = vst.msk [vmem:[%s1237_s25 + $0xb8] sm:$0xff] %vm396_vm2, %v1133_v44  ;;  %419 = vst.msk [vmem:[%s1237_s25 + $0xb0] sm:$0xff] %vm396_vm2, %v1136_v45 }
  0xfb   : > { %v350_v40 = vpop.permute.xlu1 %349  ;;  %v348_v41 = vpop.permute.xlu0 %347 }
  0xfc   : > { %389 = vst.msk [vmem:[%s1237_s25 + $0xc8] sm:$0xff] %vm363_vm1, %v350_v40  ;;  %388 = vst.msk [vmem:[%s1237_s25 + $0xc0] sm:$0xff] %vm363_vm1, %v348_v41 }
  0xfd   : > { %422 = vst.msk [vmem:[%s1237_s25 + $0xc8] sm:$0xff] %vm396_vm2, %v1143_v48  ;;  %421 = vst.msk [vmem:[%s1237_s25 + $0xc0] sm:$0xff] %vm396_vm2, %v1146_v49 }
  0xff   : > { %v354_v44 = vpop.permute.xlu1 %353  ;;  %v352_v45 = vpop.permute.xlu0 %351 }
 0x100   : > { %391 = vst.msk [vmem:[%s1237_s25 + $0xd8] sm:$0xff] %vm363_vm1, %v354_v44  ;;  %390 = vst.msk [vmem:[%s1237_s25 + $0xd0] sm:$0xff] %vm363_vm1, %v352_v45 }
 0x101   : > { %424 = vst.msk [vmem:[%s1237_s25 + $0xd8] sm:$0xff] %vm396_vm2, %v1153_v52  ;;  %423 = vst.msk [vmem:[%s1237_s25 + $0xd0] sm:$0xff] %vm396_vm2, %v1156_v53 }
 0x103   : > { %v358_v48 = vpop.permute.xlu1 %357  ;;  %v356_v10 = vpop.permute.xlu0 %355  ;;  %435 = sbr.rel (!%p1010_p4) target bundleno = 322 (0x142), region = 28 }
 0x104   : > { %393 = vst.msk [vmem:[%s1237_s25 + $0xe8] sm:$0xff] %vm363_vm1, %v358_v48  ;;  %392 = vst.msk [vmem:[%s1237_s25 + $0xe0] sm:$0xff] %vm363_vm1, %v356_v10 }
 0x105   : > { %426 = vst.msk [vmem:[%s1237_s25 + $0xe8] sm:$0xff] %vm396_vm2, %v1163_v56  ;;  %425 = vst.msk [vmem:[%s1237_s25 + $0xe0] sm:$0xff] %vm396_vm2, %v1166_v57 }
 0x107   : > { %v362_v49 = vpop.permute.xlu1 %361  ;;  %v360_v11 = vpop.permute.xlu0 %359 }
 0x108   : > { %395 = vst.msk [vmem:[%s1237_s25 + $0xf8] sm:$0xff] %vm363_vm1, %v362_v49  ;;  %394 = vst.msk [vmem:[%s1237_s25 + $0xf0] sm:$0xff] %vm363_vm1, %v360_v11 }
 0x109   : > { %428 = vst.msk [vmem:[%s1237_s25 + $0xf8] sm:$0xff] %vm396_vm2, %v1173_v60  ;;  %427 = vst.msk [vmem:[%s1237_s25 + $0xf0] sm:$0xff] %vm396_vm2, %v1176_v61 }
 0x10a   : > { %s1626_s26 = smov (!%p438_p8, %s437_s26), 32 }
 0x10b   : > { %s777_s2 = sshll.u32 %s1626_s26, 7 }
 0x10c   : > { %p780_p9 = scmp.eq.s32.totalorder %s777_s2, 0 }
 0x10d   : > { %s1488_s3 = sshrl.u32 (!%p780_p9), %s1626_s26, 5 }
 0x10e   : > { %446 = sbr.rel (%p780_p9) target bundleno = 322 (0x142), region = 32  ;;  %p781_p10 = scmp.le.s32.totalorder (!%p780_p9), %s1488_s3, 0 }
 0x115   : > { %724 = sbr.rel (%p781_p10) target bundleno = 301 (0x12d), region = 108  ;;  %s1617_s4 = smov (!%p781_p10), %s1482_s30 }
 0x116   : > { %s1618_s5 = smov (!%p781_p10), %s1237_s25  ;;  %s1497_s6 = smov (!%p781_p10), 0  }
 0x117   : > { %s1499_s8 = smov (!%p781_p10), 0  }
 0x11c LB: >> { %v570_v52 = vld [vmem:[%s947_s5] sm:$0xff]  ;;  %v572_v53 = vld [vmem:[%s947_s5 + $0x8] sm:$0xff]  ;;  %v574_v56 = vld [vmem:[%s947_s5 + $0x10] sm:$0xff]  ;;  %s634_s9 = sadd.s32 1, %s951_s6  ;;  %s564_s8 = sadd.s32 1, %s955_s8   ;;  %s955_s8 = sphi %s1499_s8, %s564_s8   ;;  %s951_s6 = sphi %s1497_s6, %s1621_s6   ;;  %s947_s5 = sphi %s1618_s5, %s1620_s5   ;;  %s943_s4 = sphi %s1617_s4, %s1619_s4  }
 0x11d   : >> { %571 = vst [vmem:[%s943_s4] sm:$0xff] %v570_v52  ;;  %573 = vst [vmem:[%s943_s4 + $0x8] sm:$0xff] %v572_v53  ;;  %v576_v57 = vld [vmem:[%s947_s5 + $0x18] sm:$0xff]  ;;  %v578_v60 = vld [vmem:[%s947_s5 + $0x20] sm:$0xff]  ;;  %p635_p11 = scmp.ge.s32.totalorder %s634_s9, %s1488_s3  ;;  %p563_p12 = scmp.ge.s32.totalorder %s564_s8, %s1488_s3 }
 0x11e   : >> { %575 = vst [vmem:[%s943_s4 + $0x10] sm:$0xff] %v574_v56  ;;  %v580_v61 = vld [vmem:[%s947_s5 + $0x28] sm:$0xff]  ;;  %577 = vst [vmem:[%s943_s4 + $0x18] sm:$0xff] %v576_v57  ;;  %v582_v14 = vld [vmem:[%s947_s5 + $0x30] sm:$0xff] }
 0x11f   : >> { %579 = vst [vmem:[%s943_s4 + $0x20] sm:$0xff] %v578_v60  ;;  %581 = vst [vmem:[%s943_s4 + $0x28] sm:$0xff] %v580_v61  ;;  %v584_v15 = vld [vmem:[%s947_s5 + $0x38] sm:$0xff]  ;;  %v586_v18 = vld [vmem:[%s947_s5 + $0x40] sm:$0xff]  ;;  %s1628_s9 = smov (%p635_p11, %s634_s9), 0 }
 0x120   : >> { %583 = vst [vmem:[%s943_s4 + $0x30] sm:$0xff] %v582_v14  ;;  %585 = vst [vmem:[%s943_s4 + $0x38] sm:$0xff] %v584_v15  ;;  %v588_v19 = vld [vmem:[%s947_s5 + $0x48] sm:$0xff]  ;;  %v590_v22 = vld [vmem:[%s947_s5 + $0x50] sm:$0xff]  ;;  %s782_s11 = sshll.u32 %s1628_s9, 8  ;;  %s1621_s6 = smov %s1628_s9 }
 0x121   : >> { %587 = vst [vmem:[%s943_s4 + $0x40] sm:$0xff] %v586_v18  ;;  %v592_v23 = vld [vmem:[%s947_s5 + $0x58] sm:$0xff]  ;;  %589 = vst [vmem:[%s943_s4 + $0x48] sm:$0xff] %v588_v19  ;;  %v594_v26 = vld [vmem:[%s947_s5 + $0x60] sm:$0xff]  ;;  %s1555_s12 = scalar_lea.vmem %s1237_s25, %s782_s11 [#allocation2]   ;;  %s640_s14 = scalar_lea.vmem %s1482_s30, %s782_s11  }
 0x122   : >> { %591 = vst [vmem:[%s943_s4 + $0x50] sm:$0xff] %v590_v22  ;;  %593 = vst [vmem:[%s943_s4 + $0x58] sm:$0xff] %v592_v23  ;;  %v596_v27 = vld [vmem:[%s947_s5 + $0x68] sm:$0xff]  ;;  %v598_v30 = vld [vmem:[%s947_s5 + $0x70] sm:$0xff] }
 0x123   : >> { %595 = vst [vmem:[%s943_s4 + $0x60] sm:$0xff] %v594_v26  ;;  %597 = vst [vmem:[%s943_s4 + $0x68] sm:$0xff] %v596_v27  ;;  %v600_v31 = vld [vmem:[%s947_s5 + $0x78] sm:$0xff]  ;;  %v602_v34 = vld [vmem:[%s947_s5 + $0x80] sm:$0xff] }
 0x124   : >> { %599 = vst [vmem:[%s943_s4 + $0x70] sm:$0xff] %v598_v30  ;;  %v604_v35 = vld [vmem:[%s947_s5 + $0x88] sm:$0xff]  ;;  %601 = vst [vmem:[%s943_s4 + $0x78] sm:$0xff] %v600_v31  ;;  %v606_v38 = vld [vmem:[%s947_s5 + $0x90] sm:$0xff] }
 0x125   : >> { %603 = vst [vmem:[%s943_s4 + $0x80] sm:$0xff] %v602_v34  ;;  %605 = vst [vmem:[%s943_s4 + $0x88] sm:$0xff] %v604_v35  ;;  %v608_v39 = vld [vmem:[%s947_s5 + $0x98] sm:$0xff]  ;;  %v610_v42 = vld [vmem:[%s947_s5 + $0xa0] sm:$0xff] }
 0x126   : >> { %607 = vst [vmem:[%s943_s4 + $0x90] sm:$0xff] %v606_v38  ;;  %609 = vst [vmem:[%s943_s4 + $0x98] sm:$0xff] %v608_v39  ;;  %v612_v43 = vld [vmem:[%s947_s5 + $0xa8] sm:$0xff]  ;;  %v614_v46 = vld [vmem:[%s947_s5 + $0xb0] sm:$0xff]  ;;  %566 = sbr.rel (!%p563_p12) target bundleno = 284 (0x11c), region = 114 }
 0x127   : >> { %611 = vst [vmem:[%s943_s4 + $0xa0] sm:$0xff] %v610_v42  ;;  %v616_v47 = vld [vmem:[%s947_s5 + $0xb8] sm:$0xff]  ;;  %613 = vst [vmem:[%s943_s4 + $0xa8] sm:$0xff] %v612_v43  ;;  %v618_v50 = vld [vmem:[%s947_s5 + $0xc0] sm:$0xff] }
 0x128   : >> { %615 = vst [vmem:[%s943_s4 + $0xb0] sm:$0xff] %v614_v46  ;;  %617 = vst [vmem:[%s943_s4 + $0xb8] sm:$0xff] %v616_v47  ;;  %v620_v51 = vld [vmem:[%s947_s5 + $0xc8] sm:$0xff]  ;;  %v622_v54 = vld [vmem:[%s947_s5 + $0xd0] sm:$0xff] }
 0x129   : >> { %619 = vst [vmem:[%s943_s4 + $0xc0] sm:$0xff] %v618_v50  ;;  %621 = vst [vmem:[%s943_s4 + $0xc8] sm:$0xff] %v620_v51  ;;  %v624_v55 = vld [vmem:[%s947_s5 + $0xd8] sm:$0xff]  ;;  %v626_v58 = vld [vmem:[%s947_s5 + $0xe0] sm:$0xff] }
 0x12a   : >> { %623 = vst [vmem:[%s943_s4 + $0xd0] sm:$0xff] %v622_v54  ;;  %v628_v59 = vld [vmem:[%s947_s5 + $0xe8] sm:$0xff]  ;;  %625 = vst [vmem:[%s943_s4 + $0xd8] sm:$0xff] %v624_v55  ;;  %v630_v62 = vld [vmem:[%s947_s5 + $0xf0] sm:$0xff] }
 0x12b   : >> { %627 = vst [vmem:[%s943_s4 + $0xe0] sm:$0xff] %v626_v58  ;;  %629 = vst [vmem:[%s943_s4 + $0xe8] sm:$0xff] %v628_v59  ;;  %v632_v63 = vld [vmem:[%s947_s5 + $0xf8] sm:$0xff]  ;;  %s1620_s5 = smov %s1555_s12 }
 0x12c   : >> { %631 = vst [vmem:[%s943_s4 + $0xf0] sm:$0xff] %v630_v62  ;;  %633 = vst [vmem:[%s943_s4 + $0xf8] sm:$0xff] %v632_v63  ;;  %s1619_s4 = smov %s640_s14 }
 0x12d PF: > { %s1596_s15 = sand.u32 31, %s1626_s26   ;;  %s793_s16 = sshll.u32 %s1488_s3, 8 }
 0x12e   : > { %s645_s17 = scalar_lea.vmem %s1237_s25, %s793_s16 [#allocation2]   ;;  %s647_s18 = scalar_lea.vmem %s1482_s30, %s793_s16  }
 0x12f   : > { %p787_p13 = scmp.le.s32.totalorder %s1596_s15, 0 }
 0x130   : > { %s957_s19 = smov (!%p787_p13), %s647_s18   ;;  %s961_s20 = smov (!%p787_p13), %s645_s17  }
 0x131   : > { %738 = sbr.rel (%p787_p13) target bundleno = 322 (0x142), region = 119  ;;  %s965_s21 = smov (!%p787_p13), 0  }
 0x132   : > { %s969_s22 = smov (!%p787_p13), 0  }
 0x138 LB: >> { %v657_v3 = vld [vmem:[%s963_s20] sm:$0xff]  ;;  %s659_s23 = sadd.s32 1, %s967_s21  ;;  %s651_s22 = sadd.s32 1, %s971_s22   ;;  %s971_s22 = sphi %s969_s22, %s651_s22   ;;  %s967_s21 = sphi %s965_s21, %s966_s21   ;;  %s963_s20 = sphi %s961_s20, %s664_s20   ;;  %s959_s19 = sphi %s957_s19, %s665_s19  }
 0x139   : >> { %658 = vst [vmem:[%s959_s19] sm:$0xff] %v657_v3  ;;  %p660_p0 = scmp.ge.s32.totalorder %s659_s23, %s1596_s15  ;;  %p650_p1 = scmp.ge.s32.totalorder %s651_s22, %s1596_s15 }
 0x13b   : >> { %s1630_s23 = smov (%p660_p0, %s659_s23), 0  ;;  %653 = sbr.rel (!%p650_p1) target bundleno = 312 (0x138), region = 125 }
 0x13c   : >> { %s788_s24 = sshll.u32 %s1630_s23, 3  ;;  %s966_s21 = smov %s1630_s23  }
 0x13d   : >> { %s664_s20 = scalar_lea.vmem %s645_s17, %s788_s24 [#allocation2]   ;;  %s665_s19 = scalar_lea.vmem %s647_s18, %s788_s24  }
 0x142 PF: > { %p8_p2 = scmp.ge.s32.totalorder %s1000_s10, 6   ;;  %s1622_s6 = smov %s935_s7 }
 0x143   : > { %s1623_s7 = smov %s1008_s13  ;;  %s1624_s8 = smov %s1000_s10 }
 0x144   :  { %10 = sbr.rel (!%p8_p2) target bundleno = 2 (0x2), region = 136 }

</bundles_post_ra>
